<compile_context>
chip_gen: v5e
topology: v5e:2x2
jax: 0.10.0
libtpu: 0.0.40
codegen_flags: <defaults>
</compile_context>

<pallas_src>
import jax
import jax.numpy as jnp
from jax.experimental import pallas as pl
from jax.experimental.pallas import tpu as pltpu


def _round_up(x, m):
    return (x + m - 1) // m * m


def hybrid_embed_kernel(patches_ref, wc_ref, bc_ref, wp_ref, bp_ref, out_ref):
    # patches: (TM, Kc) bf16   wc: (Kc, Fp) bf16   bc: (1, Fp) f32
    # wp:      (Fp, E)  bf16   bp: (1, E)   f32    out: (TM, E)
    feat = jnp.dot(patches_ref[...], wc_ref[...],
                   preferred_element_type=jnp.float32)
    feat = jnp.maximum(feat + bc_ref[...], 0.0)            # backbone bias + ReLU
    out = jnp.dot(feat.astype(wp_ref.dtype), wp_ref[...],
                  preferred_element_type=jnp.float32)
    out_ref[...] = (out + bp_ref[...]).astype(out_ref.dtype)


def hybrid_embed(x, wc, bc, wp, bp, *, kernel, out_dtype=None,
                 tm_max=512, vmem_budget_bytes=48 * 1024 * 1024):
    """x: (B, C, H, W) NCHW float32.  Returns (B, num_patches, embed_dim).

    Defaults are v7x-safe (64 MiB VMEM/TC, 2 TCs).  On v6e, pass
    vmem_budget_bytes≈96 MiB and tm_max=1024..2048 for larger M tiles; on v5e
    pass out_dtype=jnp.bfloat16 to halve output writeback.
    """
    B, C, H, W = x.shape
    k = kernel
    fh, fw = H // k, W // k
    P = fh * fw
    Kc, F = wc.shape
    E = wp.shape[1]
    assert Kc == C * k * k
    M = B * P
    out_dtype = x.dtype if out_dtype is None else out_dtype
    out_bytes = jnp.dtype(out_dtype).itemsize

    # Only the hidden feature dim is padded (resident weights only -> ~free).
    Fp = _round_up(F, 128)

    # VMEM accounting: double-buffered patch/output tiles, double-buffered
    # (grid-invariant) weight/bias blocks, plus the per-tile f32 feat
    # intermediate and its bf16 cast copy.
    def vmem_bytes(tm):
        weights = 2 * ((Kc * Fp + Fp * E) * 2 + (Fp + E) * 4)
        io = 2 * (tm * Kc * 2 + tm * E * out_bytes)
        inter = tm * Fp * 4 + tm * Fp * 2
        return weights + io + inter

    if M <= tm_max:
        tm = M                                  # single tile; full-dim block is exempt
    else:
        tm = _round_up(tm_max, 256)
        while tm > 256 and vmem_bytes(tm) > vmem_budget_bytes:
            tm -= 256                           # step in 256s; keeps tm % 16 == 0 (bf16)
    n_tiles = pl.cdiv(M, tm)                    # partial last block is masked by Pallas

    # im2col (pure layout, kernel == stride -> non-overlapping patches), done in
    # bf16 so the one wrapper-side copy is half width.  Within-patch order
    # (C, kh, kw) matches PyTorch Conv2d weight flattening.
    # TODO(synk): fully in-kernel patch extraction (memory_space=pl.ANY + manual
    # async copies) would remove this copy unconditionally; here we rely on
    # allow_input_fusion to let XLA fuse it into the kernel's input DMA.
    patches = x.astype(jnp.bfloat16).reshape(B, C, fh, k, fw, k)
    patches = jnp.transpose(patches, (0, 2, 4, 1, 3, 5)).reshape(M, Kc)

    # bf16 MXU weights (f32 accumulation in-kernel); pad only along F.
    wc_p = jnp.pad(wc.astype(jnp.bfloat16), ((0, 0), (0, Fp - F)))
    bc_p = jnp.pad(bc.astype(jnp.float32), ((0, 0), (0, Fp - F)))
    wp_p = jnp.pad(wp.astype(jnp.bfloat16), ((0, Fp - F), (0, 0)))
    bp_p = bp.astype(jnp.float32)

    cost = pl.CostEstimate(
        flops=2 * M * Kc * Fp + 2 * M * Fp * E,
        transcendentals=0,
        bytes_accessed=M * Kc * 2 + (Kc * Fp + Fp * E) * 2
                       + (Fp + E) * 4 + M * E * out_bytes,
    )

    out = pl.pallas_call(
        hybrid_embed_kernel,
        out_shape=jax.ShapeDtypeStruct((M, E), out_dtype),
        grid=(n_tiles,),
        in_specs=[
            pl.BlockSpec((tm, Kc), lambda i: (i, 0)),   # patch rows: tiled over M (full Kc)
            pl.BlockSpec((Kc, Fp), lambda i: (0, 0)),   # conv weight: VMEM-resident
            pl.BlockSpec((1, Fp), lambda i: (0, 0)),    # conv bias
            pl.BlockSpec((Fp, E), lambda i: (0, 0)),    # proj weight: VMEM-resident
            pl.BlockSpec((1, E), lambda i: (0, 0)),     # proj bias
        ],
        out_specs=pl.BlockSpec((tm, E), lambda i: (i, 0)),
        compiler_params=pltpu.CompilerParams(
            # M tiles are fully independent -> megacore split on v7x.
            dimension_semantics=("parallel",),
            # Derived from the same budget used to pick tm (v7x-safe default).
            vmem_limit_bytes=max(vmem_budget_bytes, vmem_bytes(tm)),
            # Let XLA fuse the im2col reshape/transpose/cast into the patch DMA.
            allow_input_fusion=[True, False, False, False, False],
        ),
        cost_estimate=cost,
    )(patches, wc_p, bc_p, wp_p, bp_p)

    return out.reshape(B, P, E)


def reference(x, wc, bc, wp, bp, *, kernel):
    """Pure-JAX f32 reference of the same forward pass (for verification)."""
    B, C, H, W = x.shape
    k = kernel
    fh, fw = H // k, W // k
    F = wc.shape[1]
    w_conv = wc.T.reshape(F, C, k, k)
    feat = jax.lax.conv_general_dilated(
        x, w_conv, window_strides=(k, k), padding="VALID",
        dimension_numbers=("NCHW", "OIHW", "NCHW"))
    feat = feat + bc.reshape(1, F, 1, 1)
    feat = jnp.maximum(feat, 0.0)                          # (B, F, fh, fw)
    tok = feat.reshape(B, F, fh * fw).transpose(0, 2, 1)   # flatten(2).transpose(1,2)
    return tok @ wp + bp                                   # nn.Linear


if __name__ == "__main__":
    # Small shapes consistent with the module's forward.
    B, C, H, W = 2, 4, 16, 16          # input image, NCHW
    kernel = 4                         # backbone patchify conv kernel == stride
    feature_dim = 32                   # backbone output channels
    embed_dim = 48                     # HybridEmbed.proj out features

    key = jax.random.PRNGKey(0)
    kx, kwc, kbc, kwp, kbp = jax.random.split(key, 5)

    x = jax.random.normal(kx, (B, C, H, W), dtype=jnp.float32)

    # Deterministic synthetic parameters (no checkpoint load).
    Kc = C * kernel * kernel
    wc = jax.random.normal(kwc, (Kc, feature_dim), dtype=jnp.float32) * 0.05
    bc = jax.random.normal(kbc, (1, feature_dim), dtype=jnp.float32) * 0.01
    wp = jax.random.normal(kwp, (feature_dim, embed_dim), dtype=jnp.float32) * 0.05
    bp = jax.random.normal(kbp, (1, embed_dim), dtype=jnp.float32) * 0.01

    # f32 output here for a tight check; pass out_dtype=jnp.bfloat16 on v5e to
    # halve output writeback.
    out = hybrid_embed(x, wc, bc, wp, bp, kernel=kernel)
    out = jax.block_until_ready(out)

    ref = reference(x, wc, bc, wp, bp, kernel=kernel)
    assert out.shape == (B, (H // kernel) * (W // kernel), embed_dim), out.shape
    # bf16 MXU operands with f32 accumulation -> relaxed (but still tight) tolerance.
    assert jnp.allclose(out, ref, atol=1e-2, rtol=1e-2), "mismatch vs reference"

    print("KERNEL_OK")
</pallas_src>

<mosaic_0001>
module attributes {stable_mosaic.version = 11 : i64} {
  func.func @hybrid_embed_kernel(%arg0: i32, %arg1: memref<32x64xbf16, #tpu.memory_space<vmem>>, %arg2: memref<64x128xbf16, #tpu.memory_space<vmem>>, %arg3: memref<1x128xf32, #tpu.memory_space<vmem>>, %arg4: memref<128x48xbf16, #tpu.memory_space<vmem>>, %arg5: memref<1x48xf32, #tpu.memory_space<vmem>>, %arg6: memref<32x48xf32, #tpu.memory_space<vmem>>) attributes {dimension_semantics = [#tpu.dimension_semantics<parallel>], iteration_bounds = array<i64: 1>, scalar_prefetch = 0 : i64, scratch_operands = 0 : i64, tpu.core_type = #tpu.core_type<tc>, window_params = [{transform_indices = @transform_0, window_bounds = array<i64: 32, 64>}, {pipeline_mode = #tpu.pipeline_mode<synchronous>, transform_indices = @transform_1, window_bounds = array<i64: 64, 128>}, {pipeline_mode = #tpu.pipeline_mode<synchronous>, transform_indices = @transform_2, window_bounds = array<i64: 1, 128>}, {pipeline_mode = #tpu.pipeline_mode<synchronous>, transform_indices = @transform_3, window_bounds = array<i64: 128, 48>}, {pipeline_mode = #tpu.pipeline_mode<synchronous>, transform_indices = @transform_4, window_bounds = array<i64: 1, 48>}, {transform_indices = @transform_5, window_bounds = array<i64: 32, 48>}]} {
    %c0 = arith.constant 0 : index
    %c0_0 = arith.constant 0 : index
    %0 = vector.load %arg1[%c0, %c0_0] : memref<32x64xbf16, #tpu.memory_space<vmem>>, vector<32x64xbf16>
    %c0_1 = arith.constant 0 : index
    %c0_2 = arith.constant 0 : index
    %1 = vector.load %arg2[%c0_1, %c0_2] : memref<64x128xbf16, #tpu.memory_space<vmem>>, vector<64x128xbf16>
    %cst = arith.constant dense<0.000000e+00> : vector<32x128xf32>
    %2 = tpu.matmul %0, %1, %cst {dimension_numbers = #tpu.dot_dimension_numbers<[1], [0], [0], [1], [0, 0, 1, 1], [], []>} : vector<32x64xbf16>, vector<64x128xbf16>, vector<32x128xf32> -> vector<32x128xf32>
    %c0_3 = arith.constant 0 : index
    %c0_4 = arith.constant 0 : index
    %3 = vector.load %arg3[%c0_3, %c0_4] : memref<1x128xf32, #tpu.memory_space<vmem>>, vector<1x128xf32>
    %4 = vector.broadcast %3 : vector<1x128xf32> to vector<32x128xf32>
    %5 = arith.addf %2, %4 : vector<32x128xf32>
    %cst_5 = arith.constant 0.000000e+00 : f32
    %6 = vector.broadcast %cst_5 : f32 to vector<32x128xf32>
    %7 = arith.maximumf %5, %6 : vector<32x128xf32>
    %8 = arith.truncf %7 : vector<32x128xf32> to vector<32x128xbf16>
    %c0_6 = arith.constant 0 : index
    %c0_7 = arith.constant 0 : index
    %9 = vector.load %arg4[%c0_6, %c0_7] : memref<128x48xbf16, #tpu.memory_space<vmem>>, vector<128x48xbf16>
    %cst_8 = arith.constant dense<0.000000e+00> : vector<32x48xf32>
    %10 = tpu.matmul %8, %9, %cst_8 {dimension_numbers = #tpu.dot_dimension_numbers<[1], [0], [0], [1], [0, 0, 1, 1], [], []>} : vector<32x128xbf16>, vector<128x48xbf16>, vector<32x48xf32> -> vector<32x48xf32>
    %c0_9 = arith.constant 0 : index
    %c0_10 = arith.constant 0 : index
    %11 = vector.load %arg5[%c0_9, %c0_10] : memref<1x48xf32, #tpu.memory_space<vmem>>, vector<1x48xf32>
    %12 = vector.broadcast %11 : vector<1x48xf32> to vector<32x48xf32>
    %13 = arith.addf %10, %12 : vector<32x48xf32>
    %c0_11 = arith.constant 0 : index
    %c0_12 = arith.constant 0 : index
    %14 = vector.load %arg6[%c0_11, %c0_12] : memref<32x48xf32, #tpu.memory_space<vmem>>, vector<32x48xf32>
    tpu.vector_store %arg6[%c0_11, %c0_12], %13 {strides = array<i32>} : memref<32x48xf32, #tpu.memory_space<vmem>>, vector<32x48xf32>,
    return
  }
  func.func @transform_0(%arg0: i32) -> (i32, i32) {
    %c0_i32 = arith.constant 0 : i32
    %c0_i32_0 = arith.constant 0 : i32
    return %arg0, %c0_i32 : i32, i32
  }
  func.func @transform_1(%arg0: i32) -> (i32, i32) {
    %c0_i32 = arith.constant 0 : i32
    %c0_i32_0 = arith.constant 0 : i32
    %c0_i32_1 = arith.constant 0 : i32
    return %c0_i32, %c0_i32_0 : i32, i32
  }
  func.func @transform_2(%arg0: i32) -> (i32, i32) {
    %c0_i32 = arith.constant 0 : i32
    %c0_i32_0 = arith.constant 0 : i32
    %c0_i32_1 = arith.constant 0 : i32
    return %c0_i32, %c0_i32_0 : i32, i32
  }
  func.func @transform_3(%arg0: i32) -> (i32, i32) {
    %c0_i32 = arith.constant 0 : i32
    %c0_i32_0 = arith.constant 0 : i32
    %c0_i32_1 = arith.constant 0 : i32
    return %c0_i32, %c0_i32_0 : i32, i32
  }
  func.func @transform_4(%arg0: i32) -> (i32, i32) {
    %c0_i32 = arith.constant 0 : i32
    %c0_i32_0 = arith.constant 0 : i32
    %c0_i32_1 = arith.constant 0 : i32
    return %c0_i32, %c0_i32_0 : i32, i32
  }
  func.func @transform_5(%arg0: i32) -> (i32, i32) {
    %c0_i32 = arith.constant 0 : i32
    %c0_i32_0 = arith.constant 0 : i32
    return %arg0, %c0_i32 : i32, i32
  }
}

</mosaic_0001>

<bundles_post_ra>
// kernel: tpu_custom_call.1
= control target key start
LH: loop header
LB: loop body
LE: loop exit
PB: predicated region body
PF: predicated region fallthrough
CT: control target
= control target key end

     0   :  { %s417_s0 = inlined_call_operand.vmem [shape: bf16[32,64], index: 0, kind: input, shape index: {}]   ;;  %s418_s1 = inlined_call_operand.vmem [shape: bf16[64,128], index: 1, kind: input, shape index: {}]   ;;  %s419_s2 = inlined_call_operand.vmem [shape: f32[1,128], index: 2, kind: input, shape index: {}]   ;;  %s420_s3 = inlined_call_operand.vmem [shape: bf16[128,48], index: 3, kind: input, shape index: {}]   ;;  %s421_s4 = inlined_call_operand.vmem [shape: f32[1,48], index: 4, kind: input, shape index: {}]   ;;  %s422_s5 = inlined_call_operand.hbm [shape: f32[32,48], index: 5, kind: output, shape index: {}]  }
   0x1   :  { %v277_v0 = vld [vmem:[%s418_s1 + $0x18] sm:$0xff]  ;;  %v276_v1 = vld [vmem:[%s418_s1 + $0x10] sm:$0xff] }
   0x2   :  { %83 = vmatpush.bf16.msra.mxu0 %v277_v0  ;;  %286 = vmatpush.bf16.msra.mxu3 %v277_v0  ;;  %v285_v2 = vld [vmem:[%s420_s3 + $0x38] sm:$0xff]  ;;  %v284_v3 = vld [vmem:[%s420_s3 + $0x30] sm:$0xff] }
   0x3   :  { %172 = vmatpush.bf16.msra.mxu1 %v285_v2  ;;  %290 = vmatpush.bf16.msra.mxu2 %v285_v2 }
   0x4   :  { %10 = vsyncpa [#allocation3], 0  ;;  %v275_v4 = vld [vmem:[%s418_s1 + $0x8] sm:$0xff]  ;;  %v274_v6 = vld [vmem:[%s418_s1] sm:$0xff]  ;;  %vm72_vm0 = vcmask 523264   ;;  %vm191_vm1 = vcmask 392192  }
   0x5   :  { %v283_v5 = vld [vmem:[%s420_s3 + $0x28] sm:$0xff]  ;;  %v282_v7 = vld [vmem:[%s420_s3 + $0x20] sm:$0xff]  ;;  %v281_v10 = vld [vmem:[%s420_s3 + $0x18] sm:$0xff]  ;;  %s202_s25 = sshll.u32 %s422_s5, 4  ;;  %s331_s26 = smov 8   ;;  %s203_s25 = int_to_ptr.hbm [resolvable:$true] %s202_s25 }
   0x6   :  { %84 = vmatpush.bf16.msra.mxu0 %v276_v1  ;;  %287 = vmatpush.bf16.msra.mxu3 %v276_v1  ;;  %v272_v8 = vld [vmem:[%s417_s0] sm:$0xff]  ;;  %v273_v9 = vld [vmem:[%s417_s0 + $0x8] sm:$0xff]  ;;  %v280_v11 = vld [vmem:[%s420_s3 + $0x10] sm:$0xff] }
   0x7   :  { %173 = vmatpush.bf16.msra.mxu1 %v284_v3  ;;  %291 = vmatpush.bf16.msra.mxu2 %v284_v3  ;;  %v279_v12 = vld [vmem:[%s420_s3 + $0x8] sm:$0xff]  ;;  %v278_v13 = vld [vmem:[%s420_s3] sm:$0xff] }
   0x8   :  { %v301_v15 = vld [vmem:[%s419_s2] ss:$0 sm:$0xff]  ;;  %s329_s2 = smov [#allocation2]  }
   0x9   :  { %v302_v29 = vld [vmem:[%s421_s4] ss:$0 sm:$0xff]  ;;  %s200_s22 = sshll.u32 %s329_s2, 4  ;;  %s330_s4 = smov 128   ;;  %s201_s22 = int_to_ptr.vmem [resolvable:$true] %s200_s22 }
   0xa   :  { %85 = vmatpush.bf16.msra.mxu0 %v275_v4  ;;  %288 = vmatpush.bf16.msra.mxu3 %v275_v4 }
   0xb   :  { %174 = vmatpush.bf16.msra.mxu1 %v283_v5  ;;  %292 = vmatpush.bf16.msra.mxu2 %v283_v5 }
   0xe   :  { %86 = vmatpush.bf16.msra.mxu0 %v274_v6  ;;  %289 = vmatpush.bf16.msra.mxu3 %v274_v6 }
   0xf   :  { %175 = vmatpush.bf16.msra.mxu1 %v282_v7  ;;  %293 = vmatpush.bf16.msra.mxu2 %v282_v7 }
  0x11   :  { %238 = vmatmul.msk.bf16.vlgmr.msra.gmra.mxu0 %vm72_vm0, %v272_v8  ;;  %239 = vmatmul.msk.bf16.vlgmr.msra.gmra.mxu3 %vm72_vm0, %v273_v9 }
  0x13   :  { %176 = vmatpush.bf16.msra.mxu1 %v281_v10  ;;  %294 = vmatpush.bf16.msra.mxu2 %v281_v10 }
  0x17   :  { %177 = vmatpush.bf16.msra.mxu1 %v280_v11  ;;  %295 = vmatpush.bf16.msra.mxu2 %v280_v11 }
  0x1b   :  { %178 = vmatpush.bf16.msra.mxu1 %v279_v12  ;;  %296 = vmatpush.bf16.msra.mxu2 %v279_v12 }
  0x1f   :  { %179 = vmatpush.bf16.msra.mxu1 %v278_v13  ;;  %297 = vmatpush.bf16.msra.mxu2 %v278_v13 }
  0x8e   :  { %v88_v14 = vpop.f32.mrf.mxu0 }
  0x8f   :  { %v89_v16 = vadd.f32 %v301_v15, %v88_v14 }
  0x91   :  { %v98_v19 = vmax.f32 %v89_v16, 0.0 }
  0x94   :  { %v93_v17 = vpop.f32.mrf.mxu3 }
  0x95   :  { %v94_v22 = vadd.f32 %v301_v15, %v93_v17 }
  0x96   :  { %v90_v18 = vpop.f32.mrf.mxu0 }
  0x97   :  { %v91_v20 = vadd.f32 %v301_v15, %v90_v18  ;;  %v100_v26 = vmax.f32 %v94_v22, 0.0 }
  0x99   :  { %v99_v21 = vmax.f32 %v91_v20, 0.0 }
  0x9b   :  { %v102_v23 = vpack.c.bf16 %v99_v21, %v98_v19 }
  0x9c   :  { %v95_v24 = vpop.f32.mrf.mxu3 }
  0x9d   :  { %v96_v25 = vadd.f32 %v301_v15, %v95_v24  ;;  %180 = vmatmul.bf16.vlgmr.msra.gmra.mxu1 %v102_v23 }
  0x9f   :  { %v101_v27 = vmax.f32 %v96_v25, 0.0 }
  0xa1   :  { %v103_v28 = vpack.c.bf16 %v101_v27, %v100_v26 }
  0xa3   :  { %185 = vmatmul.bf16.vlgmr.msra.gmra.mxu2 %v103_v28 }
 0x11a   :  { %v181_v30 = vpop.f32.mrf.mxu1 }
 0x11b   :  { %v182_v31 = vadd.f32 %v302_v29, %v181_v30 }
 0x11d   :  { %192 = vst.msk [vmem:[#allocation2] sm:$0xff] %vm191_vm1, %v182_v31 }
 0x122   :  { %v183_v32 = vpop.f32.mrf.mxu1 }
 0x123   :  { %v184_v33 = vadd.f32 %v302_v29, %v183_v32 }
 0x125   :  { %193 = vst.msk [vmem:[#allocation2 + $0x8] sm:$0xff] %vm191_vm1, %v184_v33 }
 0x126   :  { %v186_v34 = vpop.f32.mrf.mxu2 }
 0x127   :  { %v187_v35 = vadd.f32 %v302_v29, %v186_v34 }
 0x129   :  { %194 = vst.msk [vmem:[#allocation2 + $0x10] sm:$0xff] %vm191_vm1, %v187_v35 }
 0x12e   :  { %v188_v36 = vpop.f32.mrf.mxu2 }
 0x12f   :  { %v189_v37 = vadd.f32 %v302_v29, %v188_v36 }
 0x131   :  { %195 = vst.msk [vmem:[#allocation2 + $0x18] sm:$0xff] %vm191_vm1, %v189_v37 }
 0x132   :  { %208 = dma.vmem_to_hbm [thread:$0]  %s201_s22, 512, %s203_s25, [#allocation3], %s330_s4, %s330_s4, %s331_s26  }
 0x133   :  { %327 = dma.done.wait [#allocation3], 512  }
 0x134   :  { %328 = vsyncadd [#allocation3], 4294966784 }
 0x135   :  { %213 = vsyncpa [#allocation3], 1 }

</bundles_post_ra>
